<compile_context>
chip_gen: v7x
topology: tpu7x:2x2x1
jax: 0.10.0
libtpu: 0.0.40
codegen_flags: <defaults>
</compile_context>

<pallas_src>
import math

import jax
import jax.numpy as jnp
from jax.experimental import pallas as pl
from jax.experimental.pallas import tpu as pltpu

# ---------------- small synthetic BERT config ----------------
VOCAB = 100
TYPE_VOCAB = 2
MAX_POS = 16
HIDDEN = 32
N_LAYERS = 2
N_HEADS = 4
HEAD_DIM = HIDDEN // N_HEADS
INTERMEDIATE = 64
LN_EPS = 1e-12              # BERT layer_norm_eps
SMALL_W = 128               # lane-padded width of the packed bias/LN slab

# row indices inside the packed per-layer "small params" slab
_R_BQKV, _R_BO, _R_L1G, _R_L1B, _R_B1, _R_B2, _R_L2G, _R_L2B = range(8)


# ---------------- shared math helpers (kernel + reference) ----------------
def _ln(x, g, b):
    mu = jnp.mean(x, axis=-1, keepdims=True)
    var = jnp.mean(jnp.square(x - mu), axis=-1, keepdims=True)
    return (x - mu) * jax.lax.rsqrt(var + LN_EPS) * g + b


def _gelu_tanh(x):
    # TODO(synk): HF BERT uses exact erf-GELU; the tanh approximation (<=1e-3
    # difference) is used here for robust Mosaic lowering.  Same formula is
    # used in the pure-JAX reference below, so the correctness check is exact.
    return 0.5 * x * (1.0 + jnp.tanh(0.7978845608028654 * (x + 0.044715 * x * x * x)))


# ---------------- per-(batch, layer) encoder kernel ----------------
def _encoder_layer_kernel(emb_ref, mask_ref, eln_ref, wqkv_ref, wo_ref,
                          w1_ref, w2_ref, small_ref, o_ref, h_ref):
    """One BERT encoder layer for one sequence.

    Grid = (batch, layer).  `h_ref` is a VMEM scratch carrying the hidden state
    across the layer ("arbitrary") axis; per-layer weights are the blocks
    selected by the layer grid index (streamed / prefetched by Pallas).
    """
    layer = pl.program_id(1)
    scale = 1.0 / (HEAD_DIM ** 0.5)

    # Embeddings LayerNorm, fused in (runs once per sequence).
    @pl.when(layer == 0)
    def _():
        h_ref[...] = _ln(emb_ref[0].astype(jnp.float32),
                         eln_ref[0:1, :], eln_ref[1:2, :])

    h = h_ref[...]                                   # (S, H) f32, VMEM-resident carry
    small = small_ref[0]                             # (8, SMALL_W) packed biases / LN params
    bqkv = small[_R_BQKV:_R_BQKV + 1, :3 * HIDDEN]
    bo = small[_R_BO:_R_BO + 1, :HIDDEN]
    l1g = small[_R_L1G:_R_L1G + 1, :HIDDEN]
    l1b = small[_R_L1B:_R_L1B + 1, :HIDDEN]
    b1 = small[_R_B1:_R_B1 + 1, :INTERMEDIATE]
    b2 = small[_R_B2:_R_B2 + 1, :HIDDEN]
    l2g = small[_R_L2G:_R_L2G + 1, :HIDDEN]
    l2b = small[_R_L2B:_R_L2B + 1, :HIDDEN]
    add_mask = mask_ref[0]                           # (1, S) additive attention mask

    # ---- fused QKV projection: bf16 weights, f32 accumulate ----
    qkv = jnp.dot(h.astype(jnp.bfloat16), wqkv_ref[0],
                  preferred_element_type=jnp.float32) + bqkv        # (S, 3H)

    # ---- attention: per-head, context kept entirely in registers ----
    ctx_parts = []
    for hh in range(N_HEADS):
        c0 = hh * HEAD_DIM
        q = qkv[:, c0:c0 + HEAD_DIM]
        k = qkv[:, HIDDEN + c0:HIDDEN + c0 + HEAD_DIM]
        v = qkv[:, 2 * HIDDEN + c0:2 * HIDDEN + c0 + HEAD_DIM]
        # q @ k^T via dot_general contracting last dims (no transpose materialized)
        s = jax.lax.dot_general(q, k, (((1,), (1,)), ((), ())),
                                preferred_element_type=jnp.float32) * scale
        s = s + add_mask
        s = s - jnp.max(s, axis=-1, keepdims=True)
        p = jnp.exp(s)
        p = p / jnp.sum(p, axis=-1, keepdims=True)   # exact reciprocal (review note)
        ctx_parts.append(jnp.dot(p, v, preferred_element_type=jnp.float32))
    ctx = jnp.concatenate(ctx_parts, axis=1)          # (S, H), never touches VMEM scratch

    # ---- output projection + residual + LN ----
    attn = jnp.dot(ctx.astype(jnp.bfloat16), wo_ref[0],
                   preferred_element_type=jnp.float32) + bo
    h = _ln(h + attn, l1g, l1b)

    # ---- GELU FFN + residual + LN ----
    f = jnp.dot(h.astype(jnp.bfloat16), w1_ref[0],
                preferred_element_type=jnp.float32) + b1
    f = _gelu_tanh(f)
    f = jnp.dot(f.astype(jnp.bfloat16), w2_ref[0],
                preferred_element_type=jnp.float32) + b2
    h = _ln(h + f, l2g, l2b)

    h_ref[...] = h
    o_ref[0] = h          # same block across the layer axis; last layer's value lands in HBM


# ---------------- pallas_call wrapper ----------------
def bert_encoder_pallas(emb, add_mask, packed):
    B, S, _ = emb.shape
    grid = (B, N_LAYERS)

    in_arrays = (emb, add_mask, packed["eln"], packed["wqkv"], packed["wo"],
                 packed["w1"], packed["w2"], packed["small"])
    in_specs = [
        pl.BlockSpec((1, S, HIDDEN), lambda b, l: (b, 0, 0)),              # emb
        pl.BlockSpec((1, 1, S), lambda b, l: (b, 0, 0)),                   # mask
        pl.BlockSpec((2, HIDDEN), lambda b, l: (0, 0)),                    # emb-LN g/b
        pl.BlockSpec((1, HIDDEN, 3 * HIDDEN), lambda b, l: (l, 0, 0)),     # wqkv
        pl.BlockSpec((1, HIDDEN, HIDDEN), lambda b, l: (l, 0, 0)),         # wo
        pl.BlockSpec((1, HIDDEN, INTERMEDIATE), lambda b, l: (l, 0, 0)),   # w1
        pl.BlockSpec((1, INTERMEDIATE, HIDDEN), lambda b, l: (l, 0, 0)),   # w2
        pl.BlockSpec((1, 8, SMALL_W), lambda b, l: (l, 0, 0)),             # packed biases/LN
    ]
    out_spec = pl.BlockSpec((1, S, HIDDEN), lambda b, l: (b, 0, 0))

    # Explicit scoped-VMEM budget sized from the per-step blocks (x2 for
    # double-buffering) plus generous headroom; re-derive when scaling.
    def padded_bytes(shape, dtype):
        s = list(shape)
        s[-1] = -(-s[-1] // 128) * 128
        if len(s) >= 2:
            s[-2] = -(-s[-2] // 8) * 8
        return math.prod(s) * jnp.dtype(dtype).itemsize

    block_bytes = sum(padded_bytes(spec.block_shape, a.dtype)
                      for spec, a in zip(in_specs, in_arrays))
    block_bytes += padded_bytes((1, S, HIDDEN), jnp.float32)   # output block
    block_bytes += padded_bytes((S, HIDDEN), jnp.float32)      # hidden-state carry scratch
    vmem_limit = int(max(4 * 1024 * 1024, 2 * block_bytes + 2 * 1024 * 1024))

    return pl.pallas_call(
        _encoder_layer_kernel,
        out_shape=jax.ShapeDtypeStruct((B, S, HIDDEN), jnp.float32),
        grid=grid,
        in_specs=in_specs,
        out_specs=out_spec,
        scratch_shapes=[pltpu.VMEM((S, HIDDEN), jnp.float32)],
        input_output_aliases={0: 0},   # emb is dead after the embeddings LN
        compiler_params=pltpu.CompilerParams(
            dimension_semantics=("parallel", "arbitrary"),
            vmem_limit_bytes=vmem_limit),
    )(*in_arrays)


# ---------------- deterministic parameter init ----------------
def init_params(key):
    def nrm(key, shape, std=0.02):
        return std * jax.random.normal(key, shape, jnp.float32)

    keys = iter(jax.random.split(key, 8 + N_LAYERS * 8))
    params = {
        "word_emb": nrm(next(keys), (VOCAB, HIDDEN)),
        "pos_emb": nrm(next(keys), (MAX_POS, HIDDEN)),
        "type_emb": nrm(next(keys), (TYPE_VOCAB, HIDDEN)),
        "emb_ln_g": jnp.ones((HIDDEN,), jnp.float32),
        "emb_ln_b": jnp.zeros((HIDDEN,), jnp.float32),
        "layers": [],
    }
    for _ in range(N_LAYERS):
        layer = {
            "wq": nrm(next(keys), (HIDDEN, HIDDEN)), "bq": jnp.zeros((HIDDEN,), jnp.float32),
            "wk": nrm(next(keys), (HIDDEN, HIDDEN)), "bk": jnp.zeros((HIDDEN,), jnp.float32),
            "wv": nrm(next(keys), (HIDDEN, HIDDEN)), "bv": jnp.zeros((HIDDEN,), jnp.float32),
            "wo": nrm(next(keys), (HIDDEN, HIDDEN)), "bo": jnp.zeros((HIDDEN,), jnp.float32),
            "ln1_g": jnp.ones((HIDDEN,), jnp.float32), "ln1_b": jnp.zeros((HIDDEN,), jnp.float32),
            "w1": nrm(next(keys), (HIDDEN, INTERMEDIATE)), "b1": jnp.zeros((INTERMEDIATE,), jnp.float32),
            "w2": nrm(next(keys), (INTERMEDIATE, HIDDEN)), "b2": jnp.zeros((HIDDEN,), jnp.float32),
            "ln2_g": jnp.ones((HIDDEN,), jnp.float32), "ln2_b": jnp.zeros((HIDDEN,), jnp.float32),
        }
        params["layers"].append(layer)
    return params


def pack_params(params):
    """Pack/stack weights ONCE at init (hoisted out of the jitted forward).

    Matmul weights: stacked on a leading layer axis, stored bfloat16 (native
    MXU input dtype; halves weight DMA bytes / VMEM residency).  The ten tiny
    bias / LayerNorm vectors per layer go into one lane-padded [L, 8, 128]
    f32 slab -> a single DMA descriptor per layer instead of eight.
    """
    Ls = params["layers"]

    def pad_row(v):
        v = v.reshape(-1)
        return jnp.pad(v, (0, SMALL_W - v.shape[0]))

    small = jnp.stack([
        jnp.stack([pad_row(jnp.concatenate([L["bq"], L["bk"], L["bv"]])),
                   pad_row(L["bo"]), pad_row(L["ln1_g"]), pad_row(L["ln1_b"]),
                   pad_row(L["b1"]), pad_row(L["b2"]),
                   pad_row(L["ln2_g"]), pad_row(L["ln2_b"])])
        for L in Ls]).astype(jnp.float32)                             # (L, 8, SMALL_W)

    return {
        "word_emb": params["word_emb"],
        "pos_emb": params["pos_emb"],
        "type_emb": params["type_emb"],
        "eln": jnp.stack([params["emb_ln_g"], params["emb_ln_b"]]),   # (2, H)
        "wqkv": jnp.stack([jnp.concatenate([L["wq"], L["wk"], L["wv"]], axis=1)
                           for L in Ls]).astype(jnp.bfloat16),        # (L, H, 3H)
        "wo": jnp.stack([L["wo"] for L in Ls]).astype(jnp.bfloat16),
        "w1": jnp.stack([L["w1"] for L in Ls]).astype(jnp.bfloat16),
        "w2": jnp.stack([L["w2"] for L in Ls]).astype(jnp.bfloat16),
        "small": small,
    }


# ---------------- forward pass (== Text_encoder.forward) ----------------
@jax.jit
def text_encoder_forward(packed, input_ids, attention_mask):
    B, S = input_ids.shape
    # TODO(synk): the embedding-table gather (word/pos/type lookup) stays in
    # plain JAX; everything downstream (embeddings LN + all encoder layers)
    # runs inside the fused Pallas kernel.
    emb = (packed["word_emb"][input_ids]
           + packed["pos_emb"][jnp.arange(S)][None, :, :]
           + packed["type_emb"][0][None, None, :])                    # (B, S, H)
    # HF-style extended additive attention mask: 0 attended, -1e9 masked.
    add_mask = ((1.0 - attention_mask.astype(jnp.float32)) * -1e9)[:, None, :]  # (B,1,S)
    h = bert_encoder_pallas(emb.astype(jnp.float32), add_mask, packed)
    # Dropouts are eval-mode no-ops; pooler output is unused by the module.
    return h                                                          # last_hidden_state


# ---------------- pure-JAX reference (for correctness check) ----------------
def reference_forward(params, input_ids, attention_mask):
    B, S = input_ids.shape
    h = (params["word_emb"][input_ids]
         + params["pos_emb"][jnp.arange(S)][None, :, :]
         + params["type_emb"][0][None, None, :])
    h = _ln(h, params["emb_ln_g"], params["emb_ln_b"])
    mask = ((1.0 - attention_mask.astype(jnp.float32)) * -1e9)[:, None, None, :]
    scale = 1.0 / (HEAD_DIM ** 0.5)
    for L in params["layers"]:
        def heads(x):
            return x.reshape(B, S, N_HEADS, HEAD_DIM).transpose(0, 2, 1, 3)
        q = heads(h @ L["wq"] + L["bq"])
        k = heads(h @ L["wk"] + L["bk"])
        v = heads(h @ L["wv"] + L["bv"])
        s = jnp.einsum("bhqd,bhkd->bhqk", q, k) * scale + mask
        p = jax.nn.softmax(s, axis=-1)
        ctx = jnp.einsum("bhqk,bhkd->bhqd", p, v).transpose(0, 2, 1, 3).reshape(B, S, HIDDEN)
        h = _ln(h + ctx @ L["wo"] + L["bo"], L["ln1_g"], L["ln1_b"])
        f = _gelu_tanh(h @ L["w1"] + L["b1"])
        f = f @ L["w2"] + L["b2"]
        h = _ln(h + f, L["ln2_g"], L["ln2_b"])
    return h


if __name__ == "__main__":
    key = jax.random.PRNGKey(0)
    pkey, ikey = jax.random.split(key)
    params = init_params(pkey)
    packed = pack_params(params)        # packed ONCE, outside the jitted forward

    B, S = 2, 8
    input_ids = jax.random.randint(ikey, (B, S), 0, VOCAB, dtype=jnp.int32)
    attention_mask = jnp.array([[1, 1, 1, 1, 1, 1, 1, 1],
                                [1, 1, 1, 1, 1, 1, 0, 0]], dtype=jnp.int32)

    out = text_encoder_forward(packed, input_ids, attention_mask)
    out = jax.block_until_ready(out)
    assert out.shape == (B, S, HIDDEN) and out.dtype == jnp.float32
    assert bool(jnp.all(jnp.isfinite(out)))

    # numerical check vs full-f32 pure-JAX reference (kernel streams bf16 weights)
    ref = reference_forward(params, input_ids, attention_mask)
    max_err = float(jnp.max(jnp.abs(out - ref)))
    assert max_err < 2e-2, f"mismatch vs reference: max_err={max_err}"

    print("KERNEL_OK")
</pallas_src>

<mosaic_0001>
module attributes {stable_mosaic.version = 11 : i64} {
  func.func @_encoder_layer_kernel(%arg0: i32, %arg1: i32, %arg2: memref<1x8x32xf32, #tpu.memory_space<vmem>>, %arg3: memref<1x1x8xf32, #tpu.memory_space<vmem>>, %arg4: memref<2x32xf32, #tpu.memory_space<vmem>>, %arg5: memref<1x32x96xbf16, #tpu.memory_space<vmem>>, %arg6: memref<1x32x32xbf16, #tpu.memory_space<vmem>>, %arg7: memref<1x32x64xbf16, #tpu.memory_space<vmem>>, %arg8: memref<1x64x32xbf16, #tpu.memory_space<vmem>>, %arg9: memref<1x8x128xf32, #tpu.memory_space<vmem>>, %arg10: memref<1x8x32xf32, #tpu.memory_space<vmem>>, %arg11: memref<8x32xf32, #tpu.memory_space<vmem>>) attributes {dimension_semantics = [#tpu.dimension_semantics<parallel>, #tpu.dimension_semantics<arbitrary>], iteration_bounds = array<i64: 2, 2>, scalar_prefetch = 0 : i64, scratch_operands = 1 : i64, tpu.core_type = #tpu.core_type<tc>, window_params = [{transform_indices = @transform_0, window_bounds = array<i64: 1, 8, 32>}, {transform_indices = @transform_1, window_bounds = array<i64: 1, 1, 8>}, {pipeline_mode = #tpu.pipeline_mode<synchronous>, transform_indices = @transform_2, window_bounds = array<i64: 2, 32>}, {transform_indices = @transform_3, window_bounds = array<i64: 1, 32, 96>}, {transform_indices = @transform_4, window_bounds = array<i64: 1, 32, 32>}, {transform_indices = @transform_5, window_bounds = array<i64: 1, 32, 64>}, {transform_indices = @transform_6, window_bounds = array<i64: 1, 64, 32>}, {transform_indices = @transform_7, window_bounds = array<i64: 1, 8, 128>}, {transform_indices = @transform_8, window_bounds = array<i64: 1, 8, 32>}]} {
    %c0_i32 = arith.constant 0 : i32
    %0 = arith.cmpi eq, %arg1, %c0_i32 : i32
    %1 = arith.extui %0 : i1 to i32
    %c0_i32_0 = arith.constant 0 : i32
    %2 = arith.cmpi ne, %1, %c0_i32_0 : i32
    scf.if %2 {
      %c0_62 = arith.constant 0 : index
      %c0_63 = arith.constant 0 : index
      %c0_64 = arith.constant 0 : index
      %176 = vector.load %arg2[%c0_62, %c0_63, %c0_64] : memref<1x8x32xf32, #tpu.memory_space<vmem>>, vector<1x8x32xf32>
      %177 = vector.shape_cast %176 : vector<1x8x32xf32> to vector<8x32xf32>
      %c0_65 = arith.constant 0 : index
      %c0_66 = arith.constant 0 : index
      %178 = vector.load %arg4[%c0_65, %c0_66] : memref<2x32xf32, #tpu.memory_space<vmem>>, vector<1x32xf32>
      %c1 = arith.constant 1 : index
      %c0_67 = arith.constant 0 : index
      %179 = vector.load %arg4[%c1, %c0_67] : memref<2x32xf32, #tpu.memory_space<vmem>>, vector<1x32xf32>
      %cst_68 = arith.constant dense<0.000000e+00> : vector<8xf32>
      %180 = vector.multi_reduction <add>, %177, %cst_68 [1] : vector<8x32xf32> to vector<8xf32>
      %181 = vector.shape_cast %180 : vector<8xf32> to vector<8x1xf32>
      %cst_69 = arith.constant 3.200000e+01 : f32
      %182 = vector.broadcast %cst_69 : f32 to vector<8x1xf32>
      %183 = arith.divf %181, %182 : vector<8x1xf32>
      %184 = vector.broadcast %183 : vector<8x1xf32> to vector<8x32xf32>
      %185 = arith.subf %177, %184 : vector<8x32xf32>
      %186 = arith.mulf %185, %185 : vector<8x32xf32>
      %cst_70 = arith.constant dense<0.000000e+00> : vector<8xf32>
      %187 = vector.multi_reduction <add>, %186, %cst_70 [1] : vector<8x32xf32> to vector<8xf32>
      %188 = vector.shape_cast %187 : vector<8xf32> to vector<8x1xf32>
      %cst_71 = arith.constant 3.200000e+01 : f32
      %189 = vector.broadcast %cst_71 : f32 to vector<8x1xf32>
      %190 = arith.divf %188, %189 : vector<8x1xf32>
      %191 = vector.broadcast %183 : vector<8x1xf32> to vector<8x32xf32>
      %192 = arith.subf %177, %191 : vector<8x32xf32>
      %cst_72 = arith.constant 9.99999996E-13 : f32
      %193 = vector.broadcast %cst_72 : f32 to vector<8x1xf32>
      %194 = arith.addf %190, %193 : vector<8x1xf32>
      %195 = math.rsqrt %194 : vector<8x1xf32>
      %196 = vector.broadcast %195 : vector<8x1xf32> to vector<8x32xf32>
      %197 = arith.mulf %192, %196 : vector<8x32xf32>
      %198 = vector.broadcast %178 : vector<1x32xf32> to vector<8x32xf32>
      %199 = arith.mulf %197, %198 : vector<8x32xf32>
      %200 = vector.broadcast %179 : vector<1x32xf32> to vector<8x32xf32>
      %201 = arith.addf %199, %200 : vector<8x32xf32>
      %c0_73 = arith.constant 0 : index
      %c0_74 = arith.constant 0 : index
      %202 = vector.load %arg11[%c0_73, %c0_74] : memref<8x32xf32, #tpu.memory_space<vmem>>, vector<8x32xf32>
      tpu.vector_store %arg11[%c0_73, %c0_74], %201 {strides = array<i32>} : memref<8x32xf32, #tpu.memory_space<vmem>>, vector<8x32xf32>,
    } else {
    }
    %c0 = arith.constant 0 : index
    %c0_1 = arith.constant 0 : index
    %3 = vector.load %arg11[%c0, %c0_1] : memref<8x32xf32, #tpu.memory_space<vmem>>, vector<8x32xf32>
    %c0_2 = arith.constant 0 : index
    %c0_3 = arith.constant 0 : index
    %c0_4 = arith.constant 0 : index
    %4 = vector.load %arg9[%c0_2, %c0_3, %c0_4] : memref<1x8x128xf32, #tpu.memory_space<vmem>>, vector<1x8x128xf32>
    %5 = vector.shape_cast %4 : vector<1x8x128xf32> to vector<8x128xf32>
    %6 = vector.extract_strided_slice %5 {offsets = [0, 0], sizes = [1, 96], strides = [1, 1]} : vector<8x128xf32> to vector<1x96xf32>
    %7 = vector.extract_strided_slice %5 {offsets = [1, 0], sizes = [1, 32], strides = [1, 1]} : vector<8x128xf32> to vector<1x32xf32>
    %8 = vector.extract_strided_slice %5 {offsets = [2, 0], sizes = [1, 32], strides = [1, 1]} : vector<8x128xf32> to vector<1x32xf32>
    %9 = vector.extract_strided_slice %5 {offsets = [3, 0], sizes = [1, 32], strides = [1, 1]} : vector<8x128xf32> to vector<1x32xf32>
    %10 = vector.extract_strided_slice %5 {offsets = [4, 0], sizes = [1, 64], strides = [1, 1]} : vector<8x128xf32> to vector<1x64xf32>
    %11 = vector.extract_strided_slice %5 {offsets = [5, 0], sizes = [1, 32], strides = [1, 1]} : vector<8x128xf32> to vector<1x32xf32>
    %12 = vector.extract_strided_slice %5 {offsets = [6, 0], sizes = [1, 32], strides = [1, 1]} : vector<8x128xf32> to vector<1x32xf32>
    %13 = vector.extract_strided_slice %5 {offsets = [7, 0], sizes = [1, 32], strides = [1, 1]} : vector<8x128xf32> to vector<1x32xf32>
    %c0_5 = arith.constant 0 : index
    %c0_6 = arith.constant 0 : index
    %c0_7 = arith.constant 0 : index
    %14 = vector.load %arg3[%c0_5, %c0_6, %c0_7] : memref<1x1x8xf32, #tpu.memory_space<vmem>>, vector<1x1x8xf32>
    %15 = vector.shape_cast %14 : vector<1x1x8xf32> to vector<1x8xf32>
    %16 = arith.truncf %3 : vector<8x32xf32> to vector<8x32xbf16>
    %c0_8 = arith.constant 0 : index
    %c0_9 = arith.constant 0 : index
    %c0_10 = arith.constant 0 : index
    %17 = vector.load %arg5[%c0_8, %c0_9, %c0_10] : memref<1x32x96xbf16, #tpu.memory_space<vmem>>, vector<1x32x96xbf16>
    %18 = vector.shape_cast %17 : vector<1x32x96xbf16> to vector<32x96xbf16>
    %cst = arith.constant dense<0.000000e+00> : vector<8x96xf32>
    %19 = tpu.matmul %16, %18, %cst {dimension_numbers = #tpu.dot_dimension_numbers<[1], [0], [0], [1], [0, 0, 1, 1], [], []>} : vector<8x32xbf16>, vector<32x96xbf16>, vector<8x96xf32> -> vector<8x96xf32>
    %20 = vector.broadcast %6 : vector<1x96xf32> to vector<8x96xf32>
    %21 = arith.addf %19, %20 : vector<8x96xf32>
    %22 = vector.extract_strided_slice %21 {offsets = [0, 0], sizes = [8, 8], strides = [1, 1]} : vector<8x96xf32> to vector<8x8xf32>
    %23 = vector.extract_strided_slice %21 {offsets = [0, 32], sizes = [8, 8], strides = [1, 1]} : vector<8x96xf32> to vector<8x8xf32>
    %24 = vector.extract_strided_slice %21 {offsets = [0, 64], sizes = [8, 8], strides = [1, 1]} : vector<8x96xf32> to vector<8x8xf32>
    %cst_11 = arith.constant dense<0.000000e+00> : vector<8x8xf32>
    %25 = tpu.matmul %22, %23, %cst_11 {dimension_numbers = #tpu.dot_dimension_numbers<[1], [1], [0], [0], [0, 0, 1, 0], [], []>} : vector<8x8xf32>, vector<8x8xf32>, vector<8x8xf32> -> vector<8x8xf32>
    %cst_12 = arith.constant 0.353553385 : f32
    %26 = vector.broadcast %cst_12 : f32 to vector<8x8xf32>
    %27 = arith.mulf %25, %26 : vector<8x8xf32>
    %28 = vector.broadcast %15 : vector<1x8xf32> to vector<8x8xf32>
    %29 = arith.addf %27, %28 : vector<8x8xf32>
    %cst_13 = arith.constant dense<0xFF800000> : vector<8xf32>
    %30 = vector.multi_reduction <maximumf>, %29, %cst_13 [1] : vector<8x8xf32> to vector<8xf32>
    %31 = vector.shape_cast %30 : vector<8xf32> to vector<8x1xf32>
    %32 = vector.broadcast %31 : vector<8x1xf32> to vector<8x8xf32>
    %33 = arith.subf %29, %32 : vector<8x8xf32>
    %34 = math.exp %33 : vector<8x8xf32>
    %cst_14 = arith.constant dense<0.000000e+00> : vector<8xf32>
    %35 = vector.multi_reduction <add>, %34, %cst_14 [1] : vector<8x8xf32> to vector<8xf32>
    %36 = vector.shape_cast %35 : vector<8xf32> to vector<8x1xf32>
    %37 = vector.broadcast %36 : vector<8x1xf32> to vector<8x8xf32>
    %38 = arith.divf %34, %37 : vector<8x8xf32>
    %cst_15 = arith.constant dense<0.000000e+00> : vector<8x8xf32>
    %39 = tpu.matmul %38, %24, %cst_15 {dimension_numbers = #tpu.dot_dimension_numbers<[1], [0], [0], [1], [0, 0, 1, 1], [], []>} : vector<8x8xf32>, vector<8x8xf32>, vector<8x8xf32> -> vector<8x8xf32>
    %40 = vector.extract_strided_slice %21 {offsets = [0, 8], sizes = [8, 8], strides = [1, 1]} : vector<8x96xf32> to vector<8x8xf32>
    %41 = vector.extract_strided_slice %21 {offsets = [0, 40], sizes = [8, 8], strides = [1, 1]} : vector<8x96xf32> to vector<8x8xf32>
    %42 = vector.extract_strided_slice %21 {offsets = [0, 72], sizes = [8, 8], strides = [1, 1]} : vector<8x96xf32> to vector<8x8xf32>
    %cst_16 = arith.constant dense<0.000000e+00> : vector<8x8xf32>
    %43 = tpu.matmul %40, %41, %cst_16 {dimension_numbers = #tpu.dot_dimension_numbers<[1], [1], [0], [0], [0, 0, 1, 0], [], []>} : vector<8x8xf32>, vector<8x8xf32>, vector<8x8xf32> -> vector<8x8xf32>
    %cst_17 = arith.constant 0.353553385 : f32
    %44 = vector.broadcast %cst_17 : f32 to vector<8x8xf32>
    %45 = arith.mulf %43, %44 : vector<8x8xf32>
    %46 = vector.broadcast %15 : vector<1x8xf32> to vector<8x8xf32>
    %47 = arith.addf %45, %46 : vector<8x8xf32>
    %cst_18 = arith.constant dense<0xFF800000> : vector<8xf32>
    %48 = vector.multi_reduction <maximumf>, %47, %cst_18 [1] : vector<8x8xf32> to vector<8xf32>
    %49 = vector.shape_cast %48 : vector<8xf32> to vector<8x1xf32>
    %50 = vector.broadcast %49 : vector<8x1xf32> to vector<8x8xf32>
    %51 = arith.subf %47, %50 : vector<8x8xf32>
    %52 = math.exp %51 : vector<8x8xf32>
    %cst_19 = arith.constant dense<0.000000e+00> : vector<8xf32>
    %53 = vector.multi_reduction <add>, %52, %cst_19 [1] : vector<8x8xf32> to vector<8xf32>
    %54 = vector.shape_cast %53 : vector<8xf32> to vector<8x1xf32>
    %55 = vector.broadcast %54 : vector<8x1xf32> to vector<8x8xf32>
    %56 = arith.divf %52, %55 : vector<8x8xf32>
    %cst_20 = arith.constant dense<0.000000e+00> : vector<8x8xf32>
    %57 = tpu.matmul %56, %42, %cst_20 {dimension_numbers = #tpu.dot_dimension_numbers<[1], [0], [0], [1], [0, 0, 1, 1], [], []>} : vector<8x8xf32>, vector<8x8xf32>, vector<8x8xf32> -> vector<8x8xf32>
    %58 = vector.extract_strided_slice %21 {offsets = [0, 16], sizes = [8, 8], strides = [1, 1]} : vector<8x96xf32> to vector<8x8xf32>
    %59 = vector.extract_strided_slice %21 {offsets = [0, 48], sizes = [8, 8], strides = [1, 1]} : vector<8x96xf32> to vector<8x8xf32>
    %60 = vector.extract_strided_slice %21 {offsets = [0, 80], sizes = [8, 8], strides = [1, 1]} : vector<8x96xf32> to vector<8x8xf32>
    %cst_21 = arith.constant dense<0.000000e+00> : vector<8x8xf32>
    %61 = tpu.matmul %58, %59, %cst_21 {dimension_numbers = #tpu.dot_dimension_numbers<[1], [1], [0], [0], [0, 0, 1, 0], [], []>} : vector<8x8xf32>, vector<8x8xf32>, vector<8x8xf32> -> vector<8x8xf32>
    %cst_22 = arith.constant 0.353553385 : f32
    %62 = vector.broadcast %cst_22 : f32 to vector<8x8xf32>
    %63 = arith.mulf %61, %62 : vector<8x8xf32>
    %64 = vector.broadcast %15 : vector<1x8xf32> to vector<8x8xf32>
    %65 = arith.addf %63, %64 : vector<8x8xf32>
    %cst_23 = arith.constant dense<0xFF800000> : vector<8xf32>
    %66 = vector.multi_reduction <maximumf>, %65, %cst_23 [1] : vector<8x8xf32> to vector<8xf32>
    %67 = vector.shape_cast %66 : vector<8xf32> to vector<8x1xf32>
    %68 = vector.broadcast %67 : vector<8x1xf32> to vector<8x8xf32>
    %69 = arith.subf %65, %68 : vector<8x8xf32>
    %70 = math.exp %69 : vector<8x8xf32>
    %cst_24 = arith.constant dense<0.000000e+00> : vector<8xf32>
    %71 = vector.multi_reduction <add>, %70, %cst_24 [1] : vector<8x8xf32> to vector<8xf32>
    %72 = vector.shape_cast %71 : vector<8xf32> to vector<8x1xf32>
    %73 = vector.broadcast %72 : vector<8x1xf32> to vector<8x8xf32>
    %74 = arith.divf %70, %73 : vector<8x8xf32>
    %cst_25 = arith.constant dense<0.000000e+00> : vector<8x8xf32>
    %75 = tpu.matmul %74, %60, %cst_25 {dimension_numbers = #tpu.dot_dimension_numbers<[1], [0], [0], [1], [0, 0, 1, 1], [], []>} : vector<8x8xf32>, vector<8x8xf32>, vector<8x8xf32> -> vector<8x8xf32>
    %76 = vector.extract_strided_slice %21 {offsets = [0, 24], sizes = [8, 8], strides = [1, 1]} : vector<8x96xf32> to vector<8x8xf32>
    %77 = vector.extract_strided_slice %21 {offsets = [0, 56], sizes = [8, 8], strides = [1, 1]} : vector<8x96xf32> to vector<8x8xf32>
    %78 = vector.extract_strided_slice %21 {offsets = [0, 88], sizes = [8, 8], strides = [1, 1]} : vector<8x96xf32> to vector<8x8xf32>
    %cst_26 = arith.constant dense<0.000000e+00> : vector<8x8xf32>
    %79 = tpu.matmul %76, %77, %cst_26 {dimension_numbers = #tpu.dot_dimension_numbers<[1], [1], [0], [0], [0, 0, 1, 0], [], []>} : vector<8x8xf32>, vector<8x8xf32>, vector<8x8xf32> -> vector<8x8xf32>
    %cst_27 = arith.constant 0.353553385 : f32
    %80 = vector.broadcast %cst_27 : f32 to vector<8x8xf32>
    %81 = arith.mulf %79, %80 : vector<8x8xf32>
    %82 = vector.broadcast %15 : vector<1x8xf32> to vector<8x8xf32>
    %83 = arith.addf %81, %82 : vector<8x8xf32>
    %cst_28 = arith.constant dense<0xFF800000> : vector<8xf32>
    %84 = vector.multi_reduction <maximumf>, %83, %cst_28 [1] : vector<8x8xf32> to vector<8xf32>
    %85 = vector.shape_cast %84 : vector<8xf32> to vector<8x1xf32>
    %86 = vector.broadcast %85 : vector<8x1xf32> to vector<8x8xf32>
    %87 = arith.subf %83, %86 : vector<8x8xf32>
    %88 = math.exp %87 : vector<8x8xf32>
    %cst_29 = arith.constant dense<0.000000e+00> : vector<8xf32>
    %89 = vector.multi_reduction <add>, %88, %cst_29 [1] : vector<8x8xf32> to vector<8xf32>
    %90 = vector.shape_cast %89 : vector<8xf32> to vector<8x1xf32>
    %91 = vector.broadcast %90 : vector<8x1xf32> to vector<8x8xf32>
    %92 = arith.divf %88, %91 : vector<8x8xf32>
    %cst_30 = arith.constant dense<0.000000e+00> : vector<8x8xf32>
    %93 = tpu.matmul %92, %78, %cst_30 {dimension_numbers = #tpu.dot_dimension_numbers<[1], [0], [0], [1], [0, 0, 1, 1], [], []>} : vector<8x8xf32>, vector<8x8xf32>, vector<8x8xf32> -> vector<8x8xf32>
    %94 = tpu.concatenate %39, %57, %75, %93 in 1 : vector<8x8xf32>, vector<8x8xf32>, vector<8x8xf32>, vector<8x8xf32> -> vector<8x32xf32>
    %95 = arith.truncf %94 : vector<8x32xf32> to vector<8x32xbf16>
    %c0_31 = arith.constant 0 : index
    %c0_32 = arith.constant 0 : index
    %c0_33 = arith.constant 0 : index
    %96 = vector.load %arg6[%c0_31, %c0_32, %c0_33] : memref<1x32x32xbf16, #tpu.memory_space<vmem>>, vector<1x32x32xbf16>
    %97 = vector.shape_cast %96 : vector<1x32x32xbf16> to vector<32x32xbf16>
    %cst_34 = arith.constant dense<0.000000e+00> : vector<8x32xf32>
    %98 = tpu.matmul %95, %97, %cst_34 {dimension_numbers = #tpu.dot_dimension_numbers<[1], [0], [0], [1], [0, 0, 1, 1], [], []>} : vector<8x32xbf16>, vector<32x32xbf16>, vector<8x32xf32> -> vector<8x32xf32>
    %99 = vector.broadcast %7 : vector<1x32xf32> to vector<8x32xf32>
    %100 = arith.addf %98, %99 : vector<8x32xf32>
    %101 = arith.addf %3, %100 : vector<8x32xf32>
    %cst_35 = arith.constant dense<0.000000e+00> : vector<8xf32>
    %102 = vector.multi_reduction <add>, %101, %cst_35 [1] : vector<8x32xf32> to vector<8xf32>
    %103 = vector.shape_cast %102 : vector<8xf32> to vector<8x1xf32>
    %cst_36 = arith.constant 3.200000e+01 : f32
    %104 = vector.broadcast %cst_36 : f32 to vector<8x1xf32>
    %105 = arith.divf %103, %104 : vector<8x1xf32>
    %106 = vector.broadcast %105 : vector<8x1xf32> to vector<8x32xf32>
    %107 = arith.subf %101, %106 : vector<8x32xf32>
    %108 = arith.mulf %107, %107 : vector<8x32xf32>
    %cst_37 = arith.constant dense<0.000000e+00> : vector<8xf32>
    %109 = vector.multi_reduction <add>, %108, %cst_37 [1] : vector<8x32xf32> to vector<8xf32>
    %110 = vector.shape_cast %109 : vector<8xf32> to vector<8x1xf32>
    %cst_38 = arith.constant 3.200000e+01 : f32
    %111 = vector.broadcast %cst_38 : f32 to vector<8x1xf32>
    %112 = arith.divf %110, %111 : vector<8x1xf32>
    %113 = vector.broadcast %105 : vector<8x1xf32> to vector<8x32xf32>
    %114 = arith.subf %101, %113 : vector<8x32xf32>
    %cst_39 = arith.constant 9.99999996E-13 : f32
    %115 = vector.broadcast %cst_39 : f32 to vector<8x1xf32>
    %116 = arith.addf %112, %115 : vector<8x1xf32>
    %117 = math.rsqrt %116 : vector<8x1xf32>
    %118 = vector.broadcast %117 : vector<8x1xf32> to vector<8x32xf32>
    %119 = arith.mulf %114, %118 : vector<8x32xf32>
    %120 = vector.broadcast %8 : vector<1x32xf32> to vector<8x32xf32>
    %121 = arith.mulf %119, %120 : vector<8x32xf32>
    %122 = vector.broadcast %9 : vector<1x32xf32> to vector<8x32xf32>
    %123 = arith.addf %121, %122 : vector<8x32xf32>
    %124 = arith.truncf %123 : vector<8x32xf32> to vector<8x32xbf16>
    %c0_40 = arith.constant 0 : index
    %c0_41 = arith.constant 0 : index
    %c0_42 = arith.constant 0 : index
    %125 = vector.load %arg7[%c0_40, %c0_41, %c0_42] : memref<1x32x64xbf16, #tpu.memory_space<vmem>>, vector<1x32x64xbf16>
    %126 = vector.shape_cast %125 : vector<1x32x64xbf16> to vector<32x64xbf16>
    %cst_43 = arith.constant dense<0.000000e+00> : vector<8x64xf32>
    %127 = tpu.matmul %124, %126, %cst_43 {dimension_numbers = #tpu.dot_dimension_numbers<[1], [0], [0], [1], [0, 0, 1, 1], [], []>} : vector<8x32xbf16>, vector<32x64xbf16>, vector<8x64xf32> -> vector<8x64xf32>
    %128 = vector.broadcast %10 : vector<1x64xf32> to vector<8x64xf32>
    %129 = arith.addf %127, %128 : vector<8x64xf32>
    %cst_44 = arith.constant 5.000000e-01 : f32
    %130 = vector.broadcast %cst_44 : f32 to vector<8x64xf32>
    %131 = arith.mulf %130, %129 : vector<8x64xf32>
    %cst_45 = arith.constant 4.471500e-02 : f32
    %132 = vector.broadcast %cst_45 : f32 to vector<8x64xf32>
    %133 = arith.mulf %132, %129 : vector<8x64xf32>
    %134 = arith.mulf %133, %129 : vector<8x64xf32>
    %135 = arith.mulf %134, %129 : vector<8x64xf32>
    %136 = arith.addf %129, %135 : vector<8x64xf32>
    %cst_46 = arith.constant 0.797884583 : f32
    %137 = vector.broadcast %cst_46 : f32 to vector<8x64xf32>
    %138 = arith.mulf %137, %136 : vector<8x64xf32>
    %139 = math.tanh %138 : vector<8x64xf32>
    %cst_47 = arith.constant 1.000000e+00 : f32
    %140 = vector.broadcast %cst_47 : f32 to vector<8x64xf32>
    %141 = arith.addf %140, %139 : vector<8x64xf32>
    %142 = arith.mulf %131, %141 : vector<8x64xf32>
    %143 = arith.truncf %142 : vector<8x64xf32> to vector<8x64xbf16>
    %c0_48 = arith.constant 0 : index
    %c0_49 = arith.constant 0 : index
    %c0_50 = arith.constant 0 : index
    %144 = vector.load %arg8[%c0_48, %c0_49, %c0_50] : memref<1x64x32xbf16, #tpu.memory_space<vmem>>, vector<1x64x32xbf16>
    %145 = vector.shape_cast %144 : vector<1x64x32xbf16> to vector<64x32xbf16>
    %cst_51 = arith.constant dense<0.000000e+00> : vector<8x32xf32>
    %146 = tpu.matmul %143, %145, %cst_51 {dimension_numbers = #tpu.dot_dimension_numbers<[1], [0], [0], [1], [0, 0, 1, 1], [], []>} : vector<8x64xbf16>, vector<64x32xbf16>, vector<8x32xf32> -> vector<8x32xf32>
    %147 = vector.broadcast %11 : vector<1x32xf32> to vector<8x32xf32>
    %148 = arith.addf %146, %147 : vector<8x32xf32>
    %149 = arith.addf %123, %148 : vector<8x32xf32>
    %cst_52 = arith.constant dense<0.000000e+00> : vector<8xf32>
    %150 = vector.multi_reduction <add>, %149, %cst_52 [1] : vector<8x32xf32> to vector<8xf32>
    %151 = vector.shape_cast %150 : vector<8xf32> to vector<8x1xf32>
    %cst_53 = arith.constant 3.200000e+01 : f32
    %152 = vector.broadcast %cst_53 : f32 to vector<8x1xf32>
    %153 = arith.divf %151, %152 : vector<8x1xf32>
    %154 = vector.broadcast %153 : vector<8x1xf32> to vector<8x32xf32>
    %155 = arith.subf %149, %154 : vector<8x32xf32>
    %156 = arith.mulf %155, %155 : vector<8x32xf32>
    %cst_54 = arith.constant dense<0.000000e+00> : vector<8xf32>
    %157 = vector.multi_reduction <add>, %156, %cst_54 [1] : vector<8x32xf32> to vector<8xf32>
    %158 = vector.shape_cast %157 : vector<8xf32> to vector<8x1xf32>
    %cst_55 = arith.constant 3.200000e+01 : f32
    %159 = vector.broadcast %cst_55 : f32 to vector<8x1xf32>
    %160 = arith.divf %158, %159 : vector<8x1xf32>
    %161 = vector.broadcast %153 : vector<8x1xf32> to vector<8x32xf32>
    %162 = arith.subf %149, %161 : vector<8x32xf32>
    %cst_56 = arith.constant 9.99999996E-13 : f32
    %163 = vector.broadcast %cst_56 : f32 to vector<8x1xf32>
    %164 = arith.addf %160, %163 : vector<8x1xf32>
    %165 = math.rsqrt %164 : vector<8x1xf32>
    %166 = vector.broadcast %165 : vector<8x1xf32> to vector<8x32xf32>
    %167 = arith.mulf %162, %166 : vector<8x32xf32>
    %168 = vector.broadcast %12 : vector<1x32xf32> to vector<8x32xf32>
    %169 = arith.mulf %167, %168 : vector<8x32xf32>
    %170 = vector.broadcast %13 : vector<1x32xf32> to vector<8x32xf32>
    %171 = arith.addf %169, %170 : vector<8x32xf32>
    %c0_57 = arith.constant 0 : index
    %c0_58 = arith.constant 0 : index
    %172 = vector.load %arg11[%c0_57, %c0_58] : memref<8x32xf32, #tpu.memory_space<vmem>>, vector<8x32xf32>
    tpu.vector_store %arg11[%c0_57, %c0_58], %171 {strides = array<i32>} : memref<8x32xf32, #tpu.memory_space<vmem>>, vector<8x32xf32>,
    %c0_59 = arith.constant 0 : index
    %c0_60 = arith.constant 0 : index
    %c0_61 = arith.constant 0 : index
    %173 = vector.load %arg10[%c0_59, %c0_60, %c0_61] : memref<1x8x32xf32, #tpu.memory_space<vmem>>, vector<1x8x32xf32>
    %174 = vector.shape_cast %173 : vector<1x8x32xf32> to vector<8x32xf32>
    %175 = vector.shape_cast %171 : vector<8x32xf32> to vector<1x8x32xf32>
    tpu.vector_store %arg10[%c0_59, %c0_60, %c0_61], %175 {strides = array<i32>} : memref<1x8x32xf32, #tpu.memory_space<vmem>>, vector<1x8x32xf32>,
    return
  }
  func.func @transform_0(%arg0: i32, %arg1: i32) -> (i32, i32, i32) {
    %c0_i32 = arith.constant 0 : i32
    %c0_i32_0 = arith.constant 0 : i32
    %c0_i32_1 = arith.constant 0 : i32
    return %arg0, %c0_i32, %c0_i32_0 : i32, i32, i32
  }
  func.func @transform_1(%arg0: i32, %arg1: i32) -> (i32, i32, i32) {
    %c0_i32 = arith.constant 0 : i32
    %c0_i32_0 = arith.constant 0 : i32
    %c0_i32_1 = arith.constant 0 : i32
    return %arg0, %c0_i32, %c0_i32_0 : i32, i32, i32
  }
  func.func @transform_2(%arg0: i32, %arg1: i32) -> (i32, i32) {
    %c0_i32 = arith.constant 0 : i32
    %c0_i32_0 = arith.constant 0 : i32
    %c0_i32_1 = arith.constant 0 : i32
    return %c0_i32, %c0_i32_0 : i32, i32
  }
  func.func @transform_3(%arg0: i32, %arg1: i32) -> (i32, i32, i32) {
    %c0_i32 = arith.constant 0 : i32
    %c0_i32_0 = arith.constant 0 : i32
    %c0_i32_1 = arith.constant 0 : i32
    return %arg1, %c0_i32, %c0_i32_0 : i32, i32, i32
  }
  func.func @transform_4(%arg0: i32, %arg1: i32) -> (i32, i32, i32) {
    %c0_i32 = arith.constant 0 : i32
    %c0_i32_0 = arith.constant 0 : i32
    %c0_i32_1 = arith.constant 0 : i32
    return %arg1, %c0_i32, %c0_i32_0 : i32, i32, i32
  }
  func.func @transform_5(%arg0: i32, %arg1: i32) -> (i32, i32, i32) {
    %c0_i32 = arith.constant 0 : i32
    %c0_i32_0 = arith.constant 0 : i32
    %c0_i32_1 = arith.constant 0 : i32
    return %arg1, %c0_i32, %c0_i32_0 : i32, i32, i32
  }
  func.func @transform_6(%arg0: i32, %arg1: i32) -> (i32, i32, i32) {
    %c0_i32 = arith.constant 0 : i32
    %c0_i32_0 = arith.constant 0 : i32
    %c0_i32_1 = arith.constant 0 : i32
    return %arg1, %c0_i32, %c0_i32_0 : i32, i32, i32
  }
  func.func @transform_7(%arg0: i32, %arg1: i32) -> (i32, i32, i32) {
    %c0_i32 = arith.constant 0 : i32
    %c0_i32_0 = arith.constant 0 : i32
    %c0_i32_1 = arith.constant 0 : i32
    return %arg1, %c0_i32, %c0_i32_0 : i32, i32, i32
  }
  func.func @transform_8(%arg0: i32, %arg1: i32) -> (i32, i32, i32) {
    %c0_i32 = arith.constant 0 : i32
    %c0_i32_0 = arith.constant 0 : i32
    %c0_i32_1 = arith.constant 0 : i32
    return %arg0, %c0_i32, %c0_i32_0 : i32, i32, i32
  }
}

</mosaic_0001>

<bundles_post_ra>
// kernel: text_encoder_forward.1
= control target key start
LH: loop header
LB: loop body
LE: loop exit
PB: predicated region body
PF: predicated region fallthrough
CT: control target
= control target key end

     0   :  { %s2522_s0 = inlined_call_operand.hbm [shape: f32[2,8,32], index: 0, kind: input, shape index: {}, may-alias: {0,8}]   ;;  %s2523_s1 = inlined_call_operand.vmem [shape: f32[2,1,8], index: 1, kind: input, shape index: {}]   ;;  %s2524_s2 = inlined_call_operand.vmem [shape: f32[2,32], index: 2, kind: input, shape index: {}]   ;;  %s2525_s3 = inlined_call_operand.vmem [shape: bf16[2,32,96], index: 3, kind: input, shape index: {}]   ;;  %s2526_s4 = inlined_call_operand.vmem [shape: bf16[2,32,32], index: 4, kind: input, shape index: {}]   ;;  %s2527_s5 = inlined_call_operand.vmem [shape: bf16[2,32,64], index: 5, kind: input, shape index: {}]   ;;  %s2528_s6 = inlined_call_operand.vmem [shape: bf16[2,64,32], index: 6, kind: input, shape index: {}]   ;;  %s2529_s7 = inlined_call_operand.vmem [shape: f32[2,8,128], index: 7, kind: input, shape index: {}]   ;;  %s2530_s8 = inlined_call_operand.hbm [shape: f32[2,8,32], index: 8, kind: output, shape index: {}, may-alias: {0,8}]  }
   0x1   :  { %2542 = sst [smem:[#allocation19_spill]] %s2522_s0 }
   0x2   :  { %2543 = sst [smem:[#allocation20_spill]] %s2525_s3 }
   0x3   :  { %2544 = sst [smem:[#allocation21_spill]] %s2530_s8 }
   0x4   :  { %13 = vsyncpa [#allocation4], 0 }
   0x5   :  { %15 = vsyncpa [#allocation4 + $0x1], 0 }
   0x6   :  { %16 = vsyncpa [#allocation5], 0 }
   0x7   :  { %18 = vsyncpa [#allocation5 + $0x1], 0  ;;  %s2153_s27 = smov 0   ;;  %s2155_s28 = smov 0  }
   0x8   :  { %s2157_s29 = smov 0   ;;  %s2159_s30 = smov 0  }
   0x9   :  { %s2161_s9 = smov 0   ;;  %s2163_s10 = smov 0  }
   0xa   :  { %s2165_s11 = smov 0   ;;  %s2167_s12 = smov 0  }
   0xb LB: > { %2545 = sst [smem:[#allocation9_spill]] %s2060_s27  ;;  %s1670_s13 = sadd.s32 4294967295, %s2088_s12   ;;  %s2088_s12 = sphi %s2167_s12, %s24_s12   ;;  %s2084_s11 = sphi %s2165_s11, %s2577_s11   ;;  %s2080_s10 = sphi %s2163_s10, %s2576_s10   ;;  %s2076_s9 = sphi %s2161_s9, %s2575_s9   ;;  %s2072_s30 = sphi %s2159_s30, %s2574_s30   ;;  %s2068_s29 = sphi %s2157_s29, %s2573_s29   ;;  %s2064_s28 = sphi %s2155_s28, %s2572_s28   ;;  %s2060_s27 = sphi %s2153_s27, %s2571_s27  }
   0xc   : > { %2546 = sst [smem:[#allocation10_spill]] %s2064_s28  ;;  %s1671_s14 = sadd.s32 4294967294, %s2088_s12  }
   0xd   : > { %2547 = sst [smem:[#allocation11_spill]] %s2068_s29  ;;  %s33_s15 = sadd.s32 1, %s2080_s10 }
   0xe   : > { %2548 = sst [smem:[#allocation12_spill]] %s2080_s10  ;;  %s36_s16 = sadd.s32 1, %s2084_s11 }
   0xf   : > { %2549 = sst [smem:[#allocation13_spill]] %s2084_s11  ;;  %p34_p0 = scmp.ge.s32.totalorder %s33_s15, 2 }
  0x10   : > { %2550 = sst [smem:[#allocation14_spill]] %s2088_s12  ;;  %s43_s17 = sadd.s32 1, %s2068_s29 }
  0x11   : > { %p50_p1 = scmp.ne.s32.totalorder %s2068_s29, %s2064_s28  ;;  %p51_p2 = scmp.eq.s32.totalorder %s2088_s12, 0 }
  0x12   : > { %s2579_s15 = smov (%p34_p0, %s33_s15), 0  ;;  %s2581_s16 = smov (!%p34_p0, %s36_s16), %s2084_s11 }
  0x13   : > { %2551 = sst [smem:[#allocation15_spill]] %s2579_s15  ;;  %p2204_p3 = por %p51_p2, %p50_p1 }
  0x14   : > { %p56_p4 = scmp.ne.s32.totalorder %s2064_s28, %s2060_s27  ;;  %p38_p5 = scmp.ge.s32.totalorder %s2581_s16, 2 }
  0x15   : > { %p57_p6 = scmp.eq.s32.totalorder %s1670_s13, 0  ;;  %p257_p7 = scmp.eq.s32.totalorder %s1670_s13, 3 }
  0x16   : > { %p263_p8 = scmp.eq.s32.totalorder %s1671_s14, 3  ;;  %s2583_s16 = smov (%p38_p5, %s2581_s16), 0 }
  0x17   : > { %2553 = sst [smem:[#allocation16_spill]] %s2583_s16  ;;  %p2212_p9 = por %p57_p6, %p56_p4 }
  0x18   : > { %p2216_p10 = por %p257_p7, %p50_p1  ;;  %s40_s21 = ssub.s32 %s2084_s11, %s2583_s16 }
  0x19   : > { %p2222_p11 = por %p263_p8, %p56_p4  ;;  %p41_p12 = scmp.eq.s32.totalorder %s40_s21, 0 }
  0x1a   : > { %s2555_s20 = scalar_select %p2216_p10, 1, 0 }
  0x1b   : > { %s2556_s22 = scalar_select %p2222_p11, 1, 0 }
  0x1c   : > { %p1844_p13 = scmp.lt.s32.totalorder %s2088_s12, 4  ;;  %s286_s23 = sand.u32 1, %s2068_s29  }
  0x1d   : > { %2557 = sst [smem:[#allocation17_spill]] %s2556_s22  ;;  %s1674_s25 = sshll.u32 %s286_s23, 3 }
  0x1e   : > { %s2229_s24 = scalar_select %p41_p12, %s2068_s29, %s43_s17  }
  0x1f   : > { %s1675_s26 = sshll.u32 %s2084_s11, 7  ;;  %s2559_s0 = sld [smem:[#allocation19_spill]] }
  0x20   : > { %2558 = sst [smem:[#allocation18_spill]] %s2229_s24  ;;  %s290_s16 = scalar_lea.vmem [#allocation3], %s1674_s25 }
  0x21   : > { %s297_s10 = sshll.u32 %s290_s16, 4  ;;  %p2241_p0 = pnand %p1844_p13, %p2204_p3  ;;  %s2237_s10 = int_to_ptr.vmem [resolvable:$true] %s297_s10 }
  0x22   : > { %s287_s17 = scalar_lea.sflag [#allocation4], %s286_s23 }
  0x23   : > { %p1962_p5 = pneg %p2241_p0 }
  0x25   : > { %s2235_s15 = scalar_lea.hbm %s2559_s0, %s1675_s26  ;;  %s1965_s18 = scalar_lea.hbm %s2559_s0, 256 }
  0x26   : > { %s1960_s26 = scalar_lea.hbm %s2235_s15, 128  ;;  %p1966_p3 = scmp.lt.u32.totalorder %s2235_s15, %s2559_s0 }
  0x27   : > { %p1961_p4 = scmp.ne.s32.totalorder %s2235_s15, %s1960_s26  ;;  %p1967_p8 = scmp.lt.u32.totalorder %s1965_s18, %s1960_s26 }
  0x28   : > { %p1969_p13 = scmp.lt.u32.totalorder %s1960_s26, %s2235_s15 }
  0x29   : > { %p1963_p6 = pnand %p1962_p5, %p1961_p4  ;;  %p1968_p12 = por %p1967_p8, %p1966_p3 }
  0x2b   : > { %p1964_p7 = pneg %p1963_p6  ;;  %p1970_p1 = por %p1969_p13, %p1968_p12 }
  0x2d   : > { %p1971_p2 = pnand %p1970_p1, %p1964_p7 }
  0x2f   : > { %1974 = shalt.err (!%p1971_p2)
}
  0x30   : > { %s1975_s23 = scalar_lea.vmem %s2237_s10, 128  ;;  %s2090_s16 = smov [#allocation3]  }
  0x31   : > { %p1976_p4 = scmp.ne.s32.totalorder %s2237_s10, %s1975_s23  ;;  %s1980_s25 = sshll.u32 %s2090_s16, 4  ;;  %s1981_s25 = int_to_ptr.vmem [resolvable:$false] %s1980_s25 }
  0x32   : > { %s1982_s13 = scalar_lea.vmem %s1981_s25, 256  ;;  %p1983_p10 = scmp.lt.s32.totalorder %s2237_s10, %s1981_s25 }
  0x33   : > { %p1978_p6 = pnand %p1976_p4, %p1962_p5  ;;  %p1984_p3 = scmp.lt.s32.totalorder %s1982_s13, %s1975_s23 }
  0x35   : > { %p1979_p11 = pneg %p1978_p6  ;;  %p1985_p8 = por %p1984_p3, %p1983_p10 }
  0x37   : > { %p1986_p12 = pnand %p1985_p8, %p1979_p11 }
  0x39   : > { %1989 = shalt.err (!%p1986_p12)
}
  0x3a   : > { %1839 = dma.hbm_to_vmem [thread:$0]  (!%p2241_p0), %s2235_s15, 128, %s2237_s10, %s287_s17  }
  0x3b   : > { %p2561_p1 = scmp.lt.s32.totalorder %s2088_s12, 5  ;;  %p2562_p2 = scmp.ge.s32.totalorder %s2088_s12, 1 }
  0x3d   : > { %p348_p5 = pnand %p2562_p2, %p2561_p1 }
  0x3e   : > { %s2277_s26 = sand.u32 (!%p348_p5), 1, %s2064_s28  }
  0x3f   : > { %351 = sbr.rel (%p348_p5) target bundleno = 3448 (0xd78), region = 52  ;;  %s1677_s18 = sshll.u32 (!%p348_p5), %s2277_s26, 3 }
  0x40   : > { %s354_s14 = scalar_lea.sflag (!%p348_p5), [#allocation4], %s2277_s26  ;;  %s357_s23 = scalar_lea.vmem (!%p348_p5), [#allocation3], %s1677_s18 }
  0x46   : > { %2051 = dma.done.wait (%p2212_p9), %s354_s14, 128  }
  0x47   : > { %2053 = vsyncadd (%p2212_p9), %s354_s14, 4294967168  ;;  %p417_p10 = scmp.lt.s32.totalorder %s2076_s9, 1  ;;  %p420_p11 = scmp.lt.s32.totalorder %s2072_s30, 1 }
  0x48   : > { %s2563_s3 = sld [smem:[#allocation20_spill]]  ;;  %p1688_p9 = scmp.ne.s32.totalorder %s2072_s30, 0 }
  0x49   : > { %s2288_s10 = scalar_select %p417_p10, %s2076_s9, 1 }
  0x4a   : > { %s421_s15 = scalar_select %p420_p11, %s2072_s30, 1 }
  0x4b   : > { %448 = sbr.rel (%p1688_p9) target bundleno = 390 (0x186), region = 60  ;;  %v449_v0 = vld [vmem:[%s357_s23] sm:$0xff] (!%p1688_p9)  ;;  %vm452_vm0 = vcmask (!%p1688_p9), 261120   ;;  %v1689_v11 = vld [vmem:[%s2524_s2] ss:$0 sm:$0xff] (!%p1688_p9) }
  0x4c   : > { %s1722_s25 = sshll.u32 %s421_s15, 4  ;;  %s1725_s13 = sshll.u32 %s421_s15, 5  ;;  %v453_v1 = vsel (!%p1688_p9), %vm452_vm0, %v449_v0, 0.0  ;;  %v1690_v13 = vld [vmem:[%s2524_s2 + $0x1] ss:$0 sm:$0xff] (!%p1688_p9) }
  0x4d   : > { %s2303_s29 = scalar_lea.vmem %s2526_s4, %s1722_s25  ;;  %s2308_s27 = scalar_lea.vmem %s2527_s5, %s1722_s25  ;;  %454 = vadd.xlane.f32.xlu0 (!%p1688_p9), %v453_v1 }
  0x4e   : > { %s2298_s19 = scalar_lea.vmem %s2563_s3, %s1722_s25  ;;  %s2313_s17 = scalar_lea.vmem %s2528_s6, %s1725_s13 }
  0x4f   : > { %s1687_s16 = sshll.u32 %s421_s15, 3  ;;  %s2320_s3 = scalar_lea.vmem [#allocation6], %s1677_s18 }
  0x50   : > { %s2318_s11 = scalar_lea.vmem %s2529_s7, %s1687_s16 }
  0xda   : > { %v455_v2 = vpop.xlane.xlu0 %454 }
  0xdb   : > { %v457_v3 = vmul.f32 0.03125, %v455_v2 }
  0xdd   : > { %v458_v4 = vsub.f32 %v449_v0, %v457_v3 }
  0xdf   : > { %v459_v5 = vmul.f32 %v458_v4, %v458_v4 }
  0xe1   : > { %v460_v6 = vsel %vm452_vm0, %v459_v5, 0.0 }
  0xe2   : > { %461 = vadd.xlane.f32.xlu0 %v460_v6 }
 0x16f   : > { %v462_v7 = vpop.xlane.xlu0 %461 }
 0x170   : > { %v463_v8 = vmul.f32 0.03125, %v462_v7 }
 0x172   : > { %v464_v9 = vadd.f32 1e-12, %v463_v8 }
 0x174   : > { %1926 = vrsqrt.f32 %v464_v9 }
 0x17e   : > { %v1927_v10 = vpop.eup %1926 }
 0x17f   : > { %v466_v12 = vmul.f32 %v1927_v10, %v458_v4 }
 0x181   : > { %v471_v14 = vmul.f32 %v1689_v11, %v466_v12 }
 0x183   : > { %v476_v15 = vadd.f32 %v1690_v13, %v471_v14 }
 0x185   : > { %477 = vst.msk [vmem:[#allocation2] sm:$0xff] %vm452_vm0, %v476_v15 }
 0x186 PF: > { %v1928_v16 = vld [vmem:[%s2298_s19] sm:$0xff]   ;;  %v2091_v17 = vmov 0.0   ;;  %v1929_v18 = vld [vmem:[%s2298_s19 + $0x8] sm:$0xff]   ;;  %vm2092_vm1 = vmmov 0   ;;  %vm502_vm2 = vcmask 261120   ;;  %v486_v21 = vlaneseq  ;;  %s2093_s22 = smov 64   ;;  %s2564_s13 = scalar_lea.vmem %s2523_s1, %s2288_s10 }
 0x187   : > { %1756 = vmatprep.subr.bf16.mxu0 %v2091_v17  ;;  %1769 = vmatprep.subr.mxu1 %v2091_v17  ;;  %v2353_v24 = vld [vmem:[%s2318_s11] sm:$0xff]  ;;  %s2094_s24 = smov 96   ;;  %s2095_s18 = smov 88   ;;  %vm549_vm3 = vcmask 64512   ;;  %vm1233_vm4 = vcmask 130048   ;;  %vm1235_vm5 = vcmask 195584  }
 0x188   : > { %1757 = vmatpush3.bf16.msra.mxu0 %v1928_v16  ;;  %1760 = vmatprep.mubr.msk.bf16.mxu0 %vm2092_vm1, %v2091_v17  ;;  %v2349_v22 = vshrl.u32 %v486_v21, 7  ;;  %s2096_s23 = smov 120   ;;  %s2097_s15 = smov 80   ;;  %v1696_v34 = vld [vmem:[%s2564_s13] ss:$0 sm:$0xff]  ;;  %vm1436_vm6 = vcmask 523264  }
 0x189   : > { %1758 = vmatprep.subr.bf16.mxu0 %v2091_v17  ;;  %1771 = vmatprep.mubr.msk.f32.mxu1 %vm2092_vm1, %v2091_v17  ;;  %s2098_s19 = smov 72   ;;  %s2099_s14 = smov 112  }
 0x18a   : > { %v488_v23 = vsub.s32 0, %v2349_v22  ;;  %s2100_s10 = smov 104   ;;  %s2101_s21 = smov 56  }
 0x18b   : > { %s2102_s0 = smov 40   ;;  %s2103_s11 = smov 48  }
 0x18c   : > { %v2338_v19 = vld [vmem:[#allocation2] sm:$0xff]  ;;  %1759 = vmatpush3.bf16.msra.mxu0 %v1929_v18  ;;  %v489_v25 = vrot.slane %v2353_v24, %v488_v23  ;;  %s2104_s8 = smov 8   ;;  %s2105_s28 = smov 16  }
 0x18d   : > { %v481_v20 = vpack.c.bf16 %v2338_v19, %v2338_v19  ;;  %1764 = vmatprep.subr.mxu0 %v2091_v17  ;;  %s2106_s30 = smov 24   ;;  %p2566_p7 = scmp.ne.s32.totalorder %s2555_s20, 0 }
 0x18f   : > { %1761 = vmatmul.mubr.msk.bf16.vlgmr.msra.gmra.mrb[0].mxu0 %vm502_vm2, %v481_v20 }
 0x190   : > { %1766 = vmatprep.mubr.msk.f32.mxu0 %vm2092_vm1, %v2091_v17 }
 0x262   : > { %v540_v26 = vpop.f32.mrb[0].mxu0 }
 0x263   : > { %v2356_v27 = vadd.f32 %v540_v26, %v489_v25  ;;  %v1762_v28 = vpop.f32.mrb[1].mxu0 }
 0x264   : > { %v543_v29 = vpop.f32.mrb[2].mxu0 }
 0x265   : > { %643 = vrot.lane.b32.xlu1 %v2356_v27, %s2093_s22  ;;  %547 = vrot.lane.b32.xlu0 %v2356_v27, %s2094_s24  ;;  %v1763_v30 = vpop.f32.mrb[3].mxu0  ;;  %s2565_s22 = sld [smem:[#allocation21_spill]] }
 0x269   : > { %721 = vrot.lane.b32.xlu1 %v2356_v27, %s2095_s18  ;;  %s1507_s18 = scalar_lea.sflag [#allocation5], %s2277_s26 }
 0x26d   : > { %719 = vrot.lane.b32.xlu1 %v2356_v27, %s2096_s23 }
 0x271   : > { %888 = vrot.lane.b32.xlu1 %v2356_v27, %s2097_s15 }
 0x2d7   : > { %v644_v31 = vpop.permute.xlu1 %643  ;;  %v548_v32 = vpop.permute.xlu0 %547 }
 0x2d8   : > { %1765 = vmatpush3.xpose.msk.msra.mxu0 %vm549_vm3, %v548_v32  ;;  %1770 = vmatpush3.msra.mxu1 %v644_v31 }
 0x2d9   : > { %1774 = vmatprep.subr.mxu1 %v2091_v17  ;;  %1779 = vmatprep.subr.mxu0 %v2091_v17 }
 0x2db   : > { %1767 = vmatmul.mubr.msk.f32.vlgmr.msra.gmra.mrb[4].mxu0 %vm549_vm3, %v2356_v27  ;;  %v722_v44 = vpop.permute.xlu1 %721 }
 0x2dc   : > { %1781 = vmatprep.mubr.msk.f32.mxu0 %vm2092_vm1, %v2091_v17 }
 0x2df   : > { %v720_v45 = vpop.permute.xlu1 %719 }
 0x2e3   : > { %v889_v46 = vpop.permute.xlu1 %888 }
 0x3ae   : > { %v620_v33 = vpop.f32.mrb[4].mxu0 }
 0x3af   : > { %v624_v35 = vmul.f32 0.35355338, %v620_v33  ;;  %v1768_v36 = vpop.f32.mrb[5].mxu0 }
 0x3b1   : > { %v631_v37 = vadd.f32 %v1696_v34, %v624_v35 }
 0x3b3   : > { %v632_v38 = vsel %vm549_vm3, %v631_v37, -inf }
 0x3b4   : > { %633 = vmax.xlane.f32.xlu0 %v632_v38  ;;  %v1931_v38 = vld [vmem:[%s2303_s29 + $0x8] sm:$0xff]  }
 0x3ca   : > { %1055 = vrot.lane.b32.xlu0 %v2356_v27, %s2098_s19 }
 0x441   : > { %v634_v39 = vpop.xlane.xlu0 %633 }
 0x442   : > { %v635_v40 = vsub.f32 %v631_v37, %v634_v39  ;;  %v1930_v37 = vld [vmem:[%s2303_s29] sm:$0xff]   ;;  %s1520_s29 = sshll.u32 %s2320_s3, 4  ;;  %s2467_s29 = int_to_ptr.vmem [resolvable:$true] %s1520_s29 }
 0x443   : > { %s1990_s23 = scalar_lea.vmem %s2467_s29, 128 }
 0x444   : > { %v636_v41 = vmul.f32 1.442695, %v635_v40  ;;  %p1991_p0 = scmp.ne.s32.totalorder %s2467_s29, %s1990_s23 }
 0x445   : > { %v1056_v51 = vpop.permute.xlu0 %1055 }
 0x446   : > { %1938 = vpow2.f32 %v636_v41  ;;  %p1992_p13 = pnand %p1991_p0, %p2566_p7 }
 0x448   : > { %p1993_p4 = pneg %p1992_p13 }
 0x450   : > { %v1939_v42 = vpop.eup %1938 }
 0x451   : > { %v638_v43 = vsel %vm549_vm3, %v1939_v42, 0.0 }
 0x452   : > { %639 = vadd.xlane.f32.xlu1 %v638_v43 }
 0x463   : > { %886 = vrot.lane.b32.xlu1 %v2356_v27, %s2099_s14 }
 0x467   : > { %1053 = vrot.lane.b32.xlu1 %v2356_v27, %s2100_s10 }
 0x4df   : > { %v640_v47 = vpop.xlane.xlu1 %639 }
 0x4e0   : > { %1940 = vrcp.f32 %v640_v47 }
 0x4e3   : > { %v887_v50 = vpop.permute.xlu1 %886 }
 0x4e7   : > { %v1054_v52 = vpop.permute.xlu1 %1053 }
 0x4ea   : > { %v1941_v48 = vpop.eup %1940 }
 0x4eb   : > { %v642_v49 = vmul.f32 %v1941_v48, %v1939_v42 }
 0x4ed   : > { %1772 = vmatmul.mubr.msk.f32.vlgmr.msra.gmra.mrb[0].mxu1 %vm549_vm3, %v642_v49 }
 0x4ee   : > { %1775 = vmatpush3.xpose.msk.msra.mxu1 %vm549_vm3, %v722_v44  ;;  %1776 = vmatprep.mubr.msk.f32.mxu1 %vm2092_vm1, %v2091_v17 }
 0x4ef   : > { %1784 = vmatprep.subr.mxu1 %v2091_v17 }
 0x4f1   : > { %1777 = vmatmul.mubr.msk.f32.vlgmr.msra.gmra.mrb[2].mxu1 %vm549_vm3, %v720_v45 }
 0x4f2   : > { %1785 = vmatpush3.xpose.msk.msra.mxu1 %vm549_vm3, %v889_v46  ;;  %1786 = vmatprep.mubr.msk.f32.mxu1 %vm2092_vm1, %v2091_v17 }
 0x4f3   : > { %1794 = vmatprep.subr.mxu1 %v2091_v17 }
 0x4f5   : > { %1787 = vmatmul.mubr.msk.f32.vlgmr.msra.gmra.mrb[4].mxu1 %vm549_vm3, %v887_v50 }
 0x4f6   : > { %1795 = vmatpush3.xpose.msk.msra.mxu1 %vm549_vm3, %v1056_v51  ;;  %1796 = vmatprep.mubr.msk.f32.mxu1 %vm2092_vm1, %v2091_v17 }
 0x4f7   : > { %1804 = vmatprep.subr.bf16.mxu1 %v2091_v17 }
 0x4f9   : > { %1797 = vmatmul.mubr.msk.f32.vlgmr.msra.gmra.mrb[6].mxu1 %vm549_vm3, %v1054_v52  ;;  %v1244_v52 = vsub.s32 1, %v2349_v22 }
 0x4fa   : > { %1808 = vmatprep.mubr.msk.bf16.mxu1 %vm2092_vm1, %v2091_v17  ;;  %1805 = vmatpush3.bf16.msra.mxu1 %v1930_v37 }
 0x4fb   : > { %1806 = vmatprep.subr.bf16.mxu1 %v2091_v17 }
 0x4fe   : > { %1807 = vmatpush3.bf16.msra.mxu1 %v1931_v38 }
 0x4ff   : > { %1820 = vmatprep.subr.bf16.mxu1 %v2091_v17 }
 0x5c0   : > { %v2398_v53 = vpop.f32.mrb[0].mxu1 }
 0x5c1   : > { %v1773_v54 = vpop.f32.mrb[1].mxu1 }
 0x5c2   : > { %v1245_v54 = vrot.slane %v2353_v24, %v1244_v52 }
 0x5c4   : > { %v793_v55 = vpop.f32.mrb[2].mxu1 }
 0x5c5   : > { %v797_v56 = vmul.f32 0.35355338, %v793_v55  ;;  %v1778_v57 = vpop.f32.mrb[3].mxu1 }
 0x5c7   : > { %v798_v58 = vadd.f32 %v1696_v34, %v797_v56 }
 0x5c8   : > { %v960_v59 = vpop.f32.mrb[4].mxu1 }
 0x5c9   : > { %v964_v60 = vmul.f32 0.35355338, %v960_v59  ;;  %v1788_v61 = vpop.f32.mrb[5].mxu1  ;;  %v799_v62 = vsel %vm549_vm3, %v798_v58, -inf }
 0x5ca   : > { %800 = vmax.xlane.f32.xlu1 %v799_v62 }
 0x5cb   : > { %v965_v63 = vadd.f32 %v1696_v34, %v964_v60 }
 0x5cc   : > { %v1127_v0 = vpop.f32.mrb[6].mxu1 }
 0x5cd   : > { %v1131_v1 = vmul.f32 0.35355338, %v1127_v0  ;;  %v1798_v2 = vpop.f32.mrb[7].mxu1  ;;  %v966_v3 = vsel %vm549_vm3, %v965_v63, -inf }
 0x5ce   : > { %967 = vmax.xlane.f32.xlu0 %v966_v3  ;;  %v1932_v2 = vld [vmem:[%s2308_s27] sm:$0xff]   ;;  %v1933_v3 = vld [vmem:[%s2308_s27 + $0x8] sm:$0xff]   ;;  %s1719_s27 = sshll.u32 %s2076_s9, 7  ;;  %s2107_s9 = smov [#allocation6]  }
 0x5cf   : > { %v1132_v4 = vadd.f32 %v1696_v34, %v1131_v1  ;;  %s2465_s24 = scalar_lea.hbm %s2565_s22, %s1719_s27  ;;  %s1994_s15 = sshll.u32 %s2107_s9, 4  ;;  %s1995_s15 = int_to_ptr.vmem [resolvable:$false] %s1994_s15 }
 0x5d0   : > { %s1996_s16 = scalar_lea.vmem %s1995_s15, 256  ;;  %p1997_p6 = scmp.lt.s32.totalorder %s2467_s29, %s1995_s15 }
 0x5d1   : > { %v1133_v5 = vsel %vm549_vm3, %v1132_v4, -inf  ;;  %p1998_p3 = scmp.lt.s32.totalorder %s1996_s16, %s1990_s23 }
 0x5d2   : > { %1134 = vmax.xlane.f32.xlu1 %v1133_v5 }
 0x5d3   : > { %p1999_p8 = por %p1998_p3, %p1997_p6 }
 0x5d5   : > { %p2000_p12 = pnand %p1999_p8, %p1993_p4 }
 0x5e3   : > { %810 = vrot.lane.b32.xlu1 %v2356_v27, %s2101_s21 }
 0x657   : > { %v801_v6 = vpop.xlane.xlu1 %800 }
 0x658   : > { %v802_v7 = vsub.f32 %v798_v58, %v801_v6  ;;  %v1318_v6 = vsub.s32 2, %v2349_v22 }
 0x65a   : > { %v803_v8 = vmul.f32 1.442695, %v802_v7  ;;  %v1323_v7 = vsub.s32 3, %v2349_v22 }
 0x65b   : > { %v968_v9 = vpop.xlane.xlu0 %967 }
 0x65c   : > { %1942 = vpow2.f32 %v803_v8  ;;  %v969_v10 = vsub.f32 %v965_v63, %v968_v9  ;;  %v1319_v8 = vrot.slane %v2353_v24, %v1318_v6 }
 0x65e   : > { %v970_v11 = vmul.f32 1.442695, %v969_v10 }
 0x65f   : > { %v1135_v12 = vpop.xlane.xlu1 %1134 }
 0x660   : > { %1944 = vpow2.f32 %v970_v11  ;;  %v1136_v13 = vsub.f32 %v1132_v4, %v1135_v12  ;;  %v1324_v11 = vrot.slane %v2353_v24, %v1323_v7 }
 0x662   : > { %v1137_v14 = vmul.f32 1.442695, %v1136_v13 }
 0x663   : > { %v811_v15 = vpop.permute.xlu1 %810 }
 0x664   : > { %1946 = vpow2.f32 %v1137_v14  ;;  %1780 = vmatpush3.msra.mxu0 %v811_v15  ;;  %v1934_v15 = vld [vmem:[%s2313_s17] sm:$0xff]  }
 0x665   : > { %1789 = vmatprep.subr.mxu0 %v2091_v17 }
 0x666   : > { %v1943_v16 = vpop.eup %1942 }
 0x667   : > { %v805_v18 = vsel %vm549_vm3, %v1943_v16, 0.0 }
 0x668   : > { %806 = vadd.xlane.f32.xlu1 %v805_v18  ;;  %v1936_v18 = vld [vmem:[%s2313_s17 + $0x10] sm:$0xff]  }
 0x66a   : > { %v1945_v20 = vpop.eup %1944 }
 0x66b   : > { %v972_v21 = vsel %vm549_vm3, %v1945_v20, 0.0 }
 0x66c   : > { %973 = vadd.xlane.f32.xlu1 %v972_v21  ;;  %v1333_v21 = vsub.s32 4, %v2349_v22 }
 0x66e   : > { %v1947_v23 = vpop.eup %1946 }
 0x66f   : > { %v1139_v25 = vsel %vm549_vm3, %v1947_v23, 0.0 }
 0x670   : > { %1140 = vadd.xlane.f32.xlu0 %v1139_v25 }
 0x67d   : > { %1144 = vrot.lane.b32.xlu1 %v2356_v27, %s2102_s0 }
 0x686   : > { %977 = vrot.lane.b32.xlu0 %v2356_v27, %s2103_s11 }
 0x6f5   : > { %v807_v26 = vpop.xlane.xlu1 %806 }
 0x6f6   : > { %1948 = vrcp.f32 %v807_v26 }
 0x6f9   : > { %v974_v28 = vpop.xlane.xlu1 %973 }
 0x6fa   : > { %1950 = vrcp.f32 %v974_v28 }
 0x6fd   : > { %v1141_v29 = vpop.xlane.xlu0 %1140  ;;  %v1145_v27 = vpop.permute.xlu1 %1144 }
 0x6fe   : > { %1952 = vrcp.f32 %v1141_v29 }
 0x700   : > { %v1949_v30 = vpop.eup %1948 }
 0x701   : > { %v809_v31 = vmul.f32 %v1949_v30, %v1943_v16  ;;  %v978_v32 = vpop.permute.xlu0 %977  ;;  %v1935_v16 = vld [vmem:[%s2313_s17 + $0x8] sm:$0xff]  }
 0x703   : > { %1782 = vmatmul.mubr.msk.f32.vlgmr.msra.gmra.mrb[6].mxu0 %vm549_vm3, %v809_v31 }
 0x704   : > { %v1951_v33 = vpop.eup %1950  ;;  %1790 = vmatpush3.msra.mxu0 %v978_v32  ;;  %1791 = vmatprep.mubr.msk.f32.mxu0 %vm2092_vm1, %v2091_v17 }
 0x705   : > { %v976_v34 = vmul.f32 %v1951_v33, %v1945_v20  ;;  %1799 = vmatprep.subr.mxu0 %v2091_v17  ;;  %v1937_v20 = vld [vmem:[%s2313_s17 + $0x18] sm:$0xff]  }
 0x707   : > { %1792 = vmatmul.mubr.msk.f32.vlgmr.msra.gmra.mrb[8].mxu0 %vm549_vm3, %v976_v34 }
 0x708   : > { %v1953_v35 = vpop.eup %1952  ;;  %1800 = vmatpush3.msra.mxu0 %v1145_v27  ;;  %1801 = vmatprep.mubr.msk.f32.mxu0 %vm2092_vm1, %v2091_v17 }
 0x709   : > { %v1143_v36 = vmul.f32 %v1953_v35, %v1947_v23  ;;  %1812 = vmatprep.subr.bf16.mxu0 %v2091_v17  ;;  %v1334_v23 = vrot.slane %v2353_v24, %v1333_v21 }
 0x70b   : > { %1802 = vmatmul.mubr.msk.f32.vlgmr.msra.gmra.mrb[10].mxu0 %vm549_vm3, %v1143_v36 }
 0x70c   : > { %1816 = vmatprep.mubr.msk.bf16.mxu0 %vm2092_vm1, %v2091_v17  ;;  %1813 = vmatpush3.bf16.msra.mxu0 %v1932_v2 }
 0x70d   : > { %1814 = vmatprep.subr.bf16.mxu0 %v2091_v17 }
 0x710   : > { %1815 = vmatpush3.bf16.msra.mxu0 %v1933_v3 }
 0x7d6   : > { %v882_v39 = vpop.f32.mrb[6].mxu0 }
 0x7d7   : > { %1221 = vrot.lane.b32.xlu1 %v882_v39, %s2104_s8  ;;  %v1783_v40 = vpop.f32.mrb[7].mxu0  ;;  %v1410_v39 = vsub.s32 5, %v2349_v22 }
 0x7d9   : > { %v1411_v40 = vrot.slane %v2353_v24, %v1410_v39 }
 0x7da   : > { %v1049_v41 = vpop.f32.mrb[8].mxu0 }
 0x7db   : > { %1225 = vrot.lane.b32.xlu0 %v1049_v41, %s2105_s28  ;;  %v1793_v42 = vpop.f32.mrb[9].mxu0 }
 0x7de   : > { %v1216_v43 = vpop.f32.mrb[10].mxu0 }
 0x7df   : > { %1229 = vrot.lane.b32.xlu1 %v1216_v43, %s2106_s30  ;;  %v1803_v44 = vpop.f32.mrb[11].mxu0 }
 0x849   : > { %v1222_v45 = vpop.permute.xlu1 %1221 }
 0x84a   : > { %v1232_v47 = vsel %vm549_vm3, %v2398_v53, %v1222_v45 }
 0x84d   : > { %v1226_v46 = vpop.permute.xlu0 %1225 }
 0x84e   : > { %v1234_v48 = vsel %vm1233_vm4, %v1232_v47, %v1226_v46 }
 0x851   : > { %v1230_v49 = vpop.permute.xlu1 %1229 }
 0x852   : > { %v1236_v50 = vsel %vm1235_vm5, %v1234_v48, %v1230_v49 }
 0x853   : > { %v1237_v51 = vpack.c.bf16 %v1236_v50, %v1236_v50 }
 0x855   : > { %1809 = vmatmul.mubr.msk.bf16.vlgmr.msra.gmra.mrb[8].mxu1 %vm502_vm2, %v1237_v51 }
 0x856   : > { %1828 = vmatprep.mubr.msk.bf16.mxu1 %vm2092_vm1, %v2091_v17  ;;  %1821 = vmatpush3.bf16.msra.mxu1 %v1934_v15 }
 0x857   : > { %1822 = vmatprep.subr.bf16.mxu1 %v2091_v17 }
 0x85a   : > { %1823 = vmatpush3.bf16.msra.mxu1 %v1935_v16 }
 0x85b   : > { %1824 = vmatprep.subr.bf16.mxu1 %v2091_v17 }
 0x85e   : > { %1825 = vmatpush3.bf16.msra.mxu1 %v1936_v18 }
 0x85f   : > { %1826 = vmatprep.subr.bf16.mxu1 %v2091_v17 }
 0x862   : > { %1827 = vmatpush3.bf16.msra.mxu1 %v1937_v20 }
 0x928   : > { %v1295_v55 = vpop.f32.mrb[8].mxu1 }
 0x929   : > { %v1296_v56 = vadd.f32 %v1295_v55, %v1245_v54  ;;  %v1810_v57 = vpop.f32.mrb[9].mxu1 }
 0x92a   : > { %v1298_v58 = vpop.f32.mrb[10].mxu1  ;;  %v1496_v57 = vsub.s32 6, %v2349_v22 }
 0x92b   : > { %v1811_v53 = vpop.f32.mrb[11].mxu1  ;;  %v1301_v59 = vadd.f32 %v1296_v56, %v2338_v19  ;;  %v1501_v58 = vsub.s32 7, %v2349_v22 }
 0x92c   : > { %v1497_v53 = vrot.slane %v2353_v24, %v1496_v57 }
 0x92d   : > { %v1302_v60 = vsel %vm502_vm2, %v1301_v59, 0.0 }
 0x92e   : > { %1303 = vadd.xlane.f32.xlu0 %v1302_v60 }
 0x9bb   : > { %v1304_v61 = vpop.xlane.xlu0 %1303 }
 0x9bc   : > { %v1306_v62 = vmul.f32 0.03125, %v1304_v61  ;;  %v1502_v61 = vrot.slane %v2353_v24, %v1501_v58 }
 0x9be   : > { %v1307_v63 = vsub.f32 %v1301_v59, %v1306_v62 }
 0x9c0   : > { %v1308_v0 = vmul.f32 %v1307_v63, %v1307_v63 }
 0x9c2   : > { %v1309_v1 = vsel %vm502_vm2, %v1308_v0, 0.0 }
 0x9c3   : > { %1310 = vadd.xlane.f32.xlu1 %v1309_v1 }
 0xa50   : > { %v1311_v4 = vpop.xlane.xlu1 %1310 }
 0xa51   : > { %v1312_v19 = vmul.f32 0.03125, %v1311_v4 }
 0xa53   : > { %v1313_v5 = vadd.f32 1e-12, %v1312_v19 }
 0xa55   : > { %1954 = vrsqrt.f32 %v1313_v5 }
 0xa5f   : > { %v1955_v9 = vpop.eup %1954 }
 0xa60   : > { %v1315_v10 = vmul.f32 %v1955_v9, %v1307_v63 }
 0xa62   : > { %v1320_v12 = vmul.f32 %v1319_v8, %v1315_v10 }
 0xa64   : > { %v1325_v13 = vadd.f32 %v1324_v11, %v1320_v12 }
 0xa66   : > { %v1326_v14 = vpack.c.bf16 %v1325_v13, %v1325_v13 }
 0xa68   : > { %1817 = vmatmul.mubr.msk.bf16.vlgmr.msra.gmra.mrb[12].mxu0 %vm502_vm2, %v1326_v14 }
 0xb3b   : > { %v1384_v25 = vpop.f32.mrb[12].mxu0 }
 0xb3c   : > { %v1385_v26 = vadd.f32 %v1384_v25, %v1334_v23  ;;  %v1818_v28 = vpop.f32.mrb[13].mxu0 }
 0xb3d   : > { %v1387_v29 = vpop.f32.mrb[14].mxu0 }
 0xb3e   : > { %v1391_v30 = vmul.f32 0.044715, %v1385_v26  ;;  %v1819_v31 = vpop.f32.mrb[15].mxu0  ;;  %v1390_v36 = vmul.f32 0.5, %v1385_v26 }
 0xb40   : > { %v1392_v32 = vmul.f32 %v1391_v30, %v1385_v26 }
 0xb42   : > { %v1393_v33 = vmul.f32 %v1392_v32, %v1385_v26 }
 0xb44   : > { %v1394_v34 = vadd.f32 %v1393_v33, %v1385_v26 }
 0xb46   : > { %v1395_v27 = vmul.f32 0.7978846, %v1394_v34 }
 0xb48   : > { %1956 = vtanh.f32 %v1395_v27 }
 0xb52   : > { %v1957_v35 = vpop.eup %1956 }
 0xb53   : > { %v1397_v37 = vadd.f32 1.0, %v1957_v35 }
 0xb55   : > { %v1398_v17 = vmul.f32 %v1397_v37, %v1390_v36 }
 0xb57   : > { %v1399_v38 = vpack.c.bf16 %v1398_v17, %v1398_v17 }
 0xb59   : > { %1829 = vmatmul.mubr.msk.bf16.vlgmr.msra.gmra.mrb[12].mxu1 %vm1436_vm6, %v1399_v38 }
 0xc2c   : > { %v1474_v41 = vpop.f32.mrb[12].mxu1 }
 0xc2d   : > { %v1475_v42 = vadd.f32 %v1474_v41, %v1411_v40  ;;  %v1830_v43 = vpop.f32.mrb[13].mxu1 }
 0xc2e   : > { %v1477_v44 = vpop.f32.mrb[14].mxu1 }
 0xc2f   : > { %v1831_v45 = vpop.f32.mrb[15].mxu1  ;;  %v1480_v46 = vadd.f32 %v1475_v42, %v1325_v13 }
 0xc31   : > { %v1481_v47 = vsel %vm502_vm2, %v1480_v46, 0.0 }
 0xc32   : > { %1482 = vadd.xlane.f32.xlu0 %v1481_v47 }
 0xcbf   : > { %v1483_v48 = vpop.xlane.xlu0 %1482 }
 0xcc0   : > { %v1484_v49 = vmul.f32 0.03125, %v1483_v48 }
 0xcc2   : > { %v1485_v50 = vsub.f32 %v1480_v46, %v1484_v49 }
 0xcc4   : > { %v1486_v51 = vmul.f32 %v1485_v50, %v1485_v50 }
 0xcc6   : > { %v1487_v52 = vsel %vm502_vm2, %v1486_v51, 0.0 }
 0xcc7   : > { %1488 = vadd.xlane.f32.xlu0 %v1487_v52 }
 0xd54   : > { %v1489_v54 = vpop.xlane.xlu0 %1488 }
 0xd55   : > { %v1490_v55 = vmul.f32 0.03125, %v1489_v54 }
 0xd57   : > { %v1491_v56 = vadd.f32 1e-12, %v1490_v55 }
 0xd59   : > { %1958 = vrsqrt.f32 %v1491_v56 }
 0xd63   : > { %v1959_v59 = vpop.eup %1958 }
 0xd64   : > { %v1493_v60 = vmul.f32 %v1959_v59, %v1485_v50 }
 0xd66   : > { %v1498_v62 = vmul.f32 %v1497_v53, %v1493_v60 }
 0xd68   : > { %v1503_v63 = vadd.f32 %v1502_v61, %v1498_v62 }
 0xd6a   : > { %1504 = vst.msk [vmem:[#allocation2] sm:$0xff] %vm502_vm2, %v1503_v63  ;;  %1505 = vst.msk [vmem:[%s2320_s3] sm:$0xff] %vm502_vm2, %v1503_v63 }
 0xd6b   : > { %2003 = shalt.err (!%p2000_p12)
}
 0xd6c   : > { %s2004_s3 = scalar_lea.hbm %s2465_s24, 128  ;;  %s2008_s13 = scalar_lea.hbm %s2565_s22, 256 }
 0xd6d   : > { %p2005_p1 = scmp.ne.s32.totalorder %s2465_s24, %s2004_s3  ;;  %p2009_p10 = scmp.lt.u32.totalorder %s2465_s24, %s2565_s22 }
 0xd6e   : > { %p2010_p11 = scmp.lt.u32.totalorder %s2008_s13, %s2004_s3  ;;  %p2012_p0 = scmp.lt.u32.totalorder %s2004_s3, %s2465_s24 }
 0xd6f   : > { %p2006_p2 = pnand %p2005_p1, %p2566_p7 }
 0xd70   : > { %p2011_p9 = por %p2010_p11, %p2009_p10 }
 0xd71   : > { %p2007_p5 = pneg %p2006_p2 }
 0xd72   : > { %p2013_p13 = por %p2012_p0, %p2011_p9 }
 0xd74   : > { %p2014_p4 = pnand %p2013_p13, %p2007_p5 }
 0xd76   : > { %2017 = shalt.err (!%p2014_p4)
}
 0xd77   : > { %1834 = dma.vmem_to_hbm [thread:$0]  (%p2566_p7), %s2467_s29, 128, %s2465_s24, %s1507_s18  }
 0xd78 PF: > { %s2567_s10 = sld [smem:[#allocation14_spill]]  ;;  %s2568_s21 = sld [smem:[#allocation9_spill]] }
 0xd79   : > { %s2569_s0 = sld [smem:[#allocation17_spill]] }
 0xd7e   : > { %p1845_p6 = scmp.ge.s32.totalorder %s2567_s10, 2  ;;  %s1532_s11 = sand.u32 1, %s2568_s21  }
 0xd7f   : > { %p2570_p3 = scmp.ne.s32.totalorder %s2569_s0, 0  ;;  %s1533_s8 = scalar_lea.sflag [#allocation5], %s1532_s11 }
 0xd81   : > { %p1841_p8 = pnand %p1845_p6, %p2570_p3 }
 0xd83   : > { %2055 = dma.done.wait (!%p1841_p8), %s1533_s8, 128  }
 0xd84   : > { %2057 = vsyncadd (!%p1841_p8), %s1533_s8, 4294967168  ;;  %s24_s12 = sadd.s32 1, %s2567_s10   ;;  %s2571_s27 = sld [smem:[#allocation10_spill]] }
 0xd85   : > { %p21_p12 = scmp.ge.s32.totalorder %s24_s12, 6   ;;  %s2572_s28 = sld [smem:[#allocation11_spill]] }
 0xd86   : > { %s2573_s29 = sld [smem:[#allocation18_spill]]  ;;  %s2574_s30 = sld [smem:[#allocation12_spill]] }
 0xd87   : > { %s2575_s9 = sld [smem:[#allocation13_spill]]  ;;  %s2576_s10 = sld [smem:[#allocation15_spill]] }
 0xd88   : > { %s2577_s11 = sld [smem:[#allocation16_spill]]  ;;  %23 = sbr.rel (!%p21_p12) target bundleno = 11 (0xb), region = 119 }
 0xd8f   :  { %1538 = vsyncpa [#allocation4], 1 }
 0xd90   :  { %1540 = vsyncpa [#allocation4 + $0x1], 1 }
 0xd91   :  { %1541 = vsyncpa [#allocation5], 1 }
 0xd92   :  { %1543 = vsyncpa [#allocation5 + $0x1], 1 }

</bundles_post_ra>
